<compile_context>
chip_gen: v7x
topology: tpu7x:2x2x1
jax: 0.10.0
libtpu: 0.0.40
codegen_flags: <defaults>
</compile_context>

<pallas_src>
import functools

import jax
import jax.numpy as jnp
import numpy as np
from jax.experimental import pallas as pl
from jax.experimental.pallas import tpu as pltpu

EPS = 1e-5
HOFF = 8  # 8-aligned sublane offset for the in-kernel H halo (rows 0..7 unused)


# --------------------------- host-side weight prep ---------------------------
def _banded_conv_weight(w, W):
    """Expand a (3,3,Ci,Co) HWIO conv weight into 3 banded matrices.

    B[ky][(j+kx-1)*Ci + ci, j*Co + co] = w[ky, kx, ci, co], clipped at the W
    edges (which implements the zero padding along W inside the matmul).
    The matmul LHS row is one full image row in the lane-dense layout
    (lane index = w*Ci + ci), so one dot per ky produces all W output columns
    already laid out lane-densely as j*Co + co.
    """
    Ci, Co = w.shape[2], w.shape[3]
    mats = []
    for ky in range(3):
        m = jnp.zeros((W * Ci, W * Co), w.dtype)
        for kx in range(3):
            band = jnp.eye(W, k=-(kx - 1), dtype=w.dtype)  # (j+kx-1, j) = 1
            m = m + jnp.kron(band, w[ky, kx])
        mats.append(m)
    return jnp.stack(mats)  # (3, W*Ci, W*Co)


# --------------------------------- kernel ------------------------------------
def _bn_lanes(y, gamma_c, beta_c, gsum, gexp, inv_p, *, relu):
    """Training-mode BatchNorm on a rows-layout activation y: (N*H, W*C).

    One-pass stats: per-lane sum and sum-of-squares, folded to per-channel with
    one tiny matmul (gsum: (W*C, C)); scale/shift broadcast back to lanes with
    gexp: (C, W*C).  var = E[y^2] - mean^2 (biased, matching PyTorch training).
    """
    rsum = jnp.sum(y, axis=0, keepdims=True)          # (1, W*C)
    rsq = jnp.sum(y * y, axis=0, keepdims=True)       # (1, W*C)
    mean = jnp.dot(rsum, gsum, preferred_element_type=jnp.float32) * inv_p
    ex2 = jnp.dot(rsq, gsum, preferred_element_type=jnp.float32) * inv_p
    var = ex2 - mean * mean
    scale_c = gamma_c * jax.lax.rsqrt(var + EPS)      # (1, C)
    shift_c = beta_c - mean * scale_c                 # (1, C)
    scale_l = jnp.dot(scale_c, gexp, preferred_element_type=jnp.float32)
    shift_l = jnp.dot(shift_c, gexp, preferred_element_type=jnp.float32)
    out = y * scale_l + shift_l
    return jnp.maximum(out, 0.0) if relu else out


def residual_kernel(x_ref, w1b_ref, w2b_ref, w3b_ref,
                    g1_ref, be1_ref, g2_ref, be2_ref, b3_ref,
                    gsum_ref, gexp_ref,
                    out_ref, xpad_scr, ypad_scr,
                    *, N, H, W, Ci, Co, has_conv3):
    M = N * H
    LCi = W * Ci
    LCo = W * Co
    inv_p = 1.0 / float(N * H * W)

    gsum = gsum_ref[...]   # (W*Co, Co)   lane -> channel fold
    gexp = gexp_ref[...]   # (Co, W*Co)   channel -> lane broadcast

    def conv3x3(pad_scr, rows, wb_ref, lci):
        # H halo: zero the scratch once, drop the image rows at an 8-aligned
        # sublane offset, then read the 3 ky taps as sublane-shifted slices.
        # W halo / kx taps are folded into the banded weight matrices, so the
        # accumulation over kx and channels happens inside the MXU.
        pad_scr[...] = jnp.zeros_like(pad_scr)
        pad_scr[:, HOFF:HOFF + H, :] = rows
        padded = pad_scr[...]
        acc = jnp.zeros((M, LCo), jnp.float32)
        for ky in range(3):
            lhs = padded[:, HOFF - 1 + ky:HOFF - 1 + ky + H, :].reshape(M, lci)
            acc = acc + jnp.dot(lhs, wb_ref[ky],
                                preferred_element_type=jnp.float32)
        return acc

    x_rows = x_ref[...]                                   # (N, H, W*Ci)

    # conv1 -> bn1 -> relu   (conv bias omitted: exactly cancelled by BN)
    y = conv3x3(xpad_scr, x_rows, w1b_ref, LCi)
    y1 = _bn_lanes(y, g1_ref[...], be1_ref[...], gsum, gexp, inv_p, relu=True)

    # conv2 -> bn2           (conv bias omitted: exactly cancelled by BN)
    y2 = conv3x3(ypad_scr, y1.reshape(N, H, LCo), w2b_ref, LCo)
    y2 = _bn_lanes(y2, g2_ref[...], be2_ref[...], gsum, gexp, inv_p, relu=False)

    # shortcut: 1x1 conv as a block-diagonal matmul in the rows layout, or identity
    xf = x_rows.reshape(M, LCi)
    if has_conv3:
        sc = jnp.dot(xf, w3b_ref[...], preferred_element_type=jnp.float32)
        sc = sc + jnp.dot(b3_ref[...], gexp, preferred_element_type=jnp.float32)
    else:
        sc = xf                                            # requires Ci == Co

    # Lane-dense output slab: (N*H, W*Co) -- full-width vector stores.
    out_ref[...] = jnp.maximum(y2 + sc, 0.0)


# -------------------------------- wrapper ------------------------------------
def residual_forward_nhwc(x_nhwc, params, *, use_1x1conv, strides=1):
    # TODO(synk): strides > 1 not implemented (module default stride=1).
    assert strides == 1, "only stride=1 supported"
    N, H, W, Ci = x_nhwc.shape
    Co = params["w1"].shape[-1]
    if not use_1x1conv:
        assert Ci == Co, "identity shortcut requires Cin == Cout"
    f32 = jnp.float32

    # Host/XLA-side constant prep (tiny): banded conv weights + BN fold matrices.
    w1b = _banded_conv_weight(params["w1"], W)                     # (3, W*Ci, W*Co)
    w2b = _banded_conv_weight(params["w2"], W)                     # (3, W*Co, W*Co)
    w3b = jnp.kron(jnp.eye(W, dtype=f32), params["w3"][0, 0])      # (W*Ci, W*Co)
    gsum = jnp.kron(jnp.ones((W, 1), f32), jnp.eye(Co, dtype=f32))  # (W*Co, Co)
    gexp = jnp.kron(jnp.ones((1, W), f32), jnp.eye(Co, dtype=f32))  # (Co, W*Co)

    x_rows = x_nhwc.reshape(N, H, W * Ci)   # lane-dense rows layout

    vmem = pl.BlockSpec(memory_space=pltpu.MemorySpace.VMEM)
    kernel = functools.partial(residual_kernel, N=N, H=H, W=W, Ci=Ci, Co=Co,
                               has_conv3=use_1x1conv)
    out = pl.pallas_call(
        kernel,
        out_shape=jax.ShapeDtypeStruct((N * H, W * Co), f32),
        in_specs=[vmem] * 11,
        out_specs=vmem,
        scratch_shapes=[
            pltpu.VMEM((N, HOFF + H + 1, W * Ci), f32),  # H-padded conv1 input
            pltpu.VMEM((N, HOFF + H + 1, W * Co), f32),  # H-padded conv2 input
        ],
        compiler_params=pltpu.CompilerParams(vmem_limit_bytes=32 * 1024 * 1024),
    )(x_rows, w1b, w2b, w3b, params["g1"], params["be1"],
      params["g2"], params["be2"], params["b3"], gsum, gexp)
    return out.reshape(N, H, W, Co)


def residual_forward_nchw(x_nchw, params, *, use_1x1conv, strides=1):
    x_nhwc = jnp.transpose(x_nchw, (0, 2, 3, 1))
    out = residual_forward_nhwc(x_nhwc, params, use_1x1conv=use_1x1conv,
                                strides=strides)
    return jnp.transpose(out, (0, 3, 1, 2))


# ---------------- plain-JAX reference for the correctness check ---------------
def ref_forward_nhwc(x, params, use_1x1conv):
    def conv(x, w, b):
        y = jax.lax.conv_general_dilated(
            x, w, window_strides=(1, 1), padding="SAME",
            dimension_numbers=("NHWC", "HWIO", "NHWC"))
        return y + b.reshape(1, 1, 1, -1)

    def bn(y, g, be):
        m = y.mean((0, 1, 2), keepdims=True)
        v = ((y - m) ** 2).mean((0, 1, 2), keepdims=True)
        return (y - m) * jax.lax.rsqrt(v + EPS) * g.reshape(1, 1, 1, -1) \
            + be.reshape(1, 1, 1, -1)

    y = jax.nn.relu(bn(conv(x, params["w1"], params["b1"]),
                       params["g1"], params["be1"]))
    y = bn(conv(y, params["w2"], params["b2"]), params["g2"], params["be2"])
    sc = conv(x, params["w3"], params["b3"]) if use_1x1conv else x
    return jax.nn.relu(y + sc)


def make_params(key, input_channels, num_channels):
    ks = jax.random.split(key, 10)
    return {
        # conv weights in HWIO layout; b1/b2 only feed the reference (the
        # Pallas kernel drops them because training-mode BN cancels them).
        "w1": 0.1 * jax.random.normal(ks[0], (3, 3, input_channels, num_channels), jnp.float32),
        "b1": 0.1 * jax.random.normal(ks[1], (1, num_channels), jnp.float32),
        "w2": 0.1 * jax.random.normal(ks[2], (3, 3, num_channels, num_channels), jnp.float32),
        "b2": 0.1 * jax.random.normal(ks[3], (1, num_channels), jnp.float32),
        "w3": 0.1 * jax.random.normal(ks[4], (1, 1, input_channels, num_channels), jnp.float32),
        "b3": 0.1 * jax.random.normal(ks[5], (1, num_channels), jnp.float32),
        "g1": 1.0 + 0.1 * jax.random.normal(ks[6], (1, num_channels), jnp.float32),
        "be1": 0.05 * jax.random.normal(ks[7], (1, num_channels), jnp.float32),
        "g2": 1.0 + 0.1 * jax.random.normal(ks[8], (1, num_channels), jnp.float32),
        "be2": 0.05 * jax.random.normal(ks[9], (1, num_channels), jnp.float32),
    }


if __name__ == "__main__":
    key = jax.random.PRNGKey(0)
    k_x, k_p = jax.random.split(key)

    N, Cin, H, W = 2, 4, 16, 16          # PyTorch-style NCHW input shape
    Cout = 8
    use_1x1conv = True                   # exercise the conv3 shortcut path

    x_nchw = jax.random.normal(k_x, (N, Cin, H, W), jnp.float32)
    params = make_params(k_p, Cin, Cout)

    out = residual_forward_nchw(x_nchw, params, use_1x1conv=use_1x1conv)
    out = jax.block_until_ready(out)

    # correctness check against a plain-JAX reference of the PyTorch forward
    x_nhwc = jnp.transpose(x_nchw, (0, 2, 3, 1))
    ref = jnp.transpose(ref_forward_nhwc(x_nhwc, params, use_1x1conv), (0, 3, 1, 2))
    np.testing.assert_allclose(np.asarray(out), np.asarray(ref),
                               rtol=5e-3, atol=5e-3)

    print("KERNEL_OK")
</pallas_src>

<mosaic_0001>
module attributes {stable_mosaic.version = 11 : i64} {
  func.func @residual_kernel(%arg0: memref<2x16x64xf32, #tpu.memory_space<vmem>>, %arg1: memref<3x64x128xf32, #tpu.memory_space<vmem>>, %arg2: memref<3x128x128xf32, #tpu.memory_space<vmem>>, %arg3: memref<64x128xf32, #tpu.memory_space<vmem>>, %arg4: memref<1x8xf32, #tpu.memory_space<vmem>>, %arg5: memref<1x8xf32, #tpu.memory_space<vmem>>, %arg6: memref<1x8xf32, #tpu.memory_space<vmem>>, %arg7: memref<1x8xf32, #tpu.memory_space<vmem>>, %arg8: memref<1x8xf32, #tpu.memory_space<vmem>>, %arg9: memref<128x8xf32, #tpu.memory_space<vmem>>, %arg10: memref<8x128xf32, #tpu.memory_space<vmem>>, %arg11: memref<32x128xf32, #tpu.memory_space<vmem>>, %arg12: memref<2x25x64xf32, #tpu.memory_space<vmem>>, %arg13: memref<2x25x128xf32, #tpu.memory_space<vmem>>) attributes {dimension_semantics = [], scalar_prefetch = 0 : i64, scratch_operands = 2 : i64, tpu.core_type = #tpu.core_type<tc>} {
    %c0 = arith.constant 0 : index
    %c0_0 = arith.constant 0 : index
    %0 = vector.load %arg9[%c0, %c0_0] : memref<128x8xf32, #tpu.memory_space<vmem>>, vector<128x8xf32>
    %c0_1 = arith.constant 0 : index
    %c0_2 = arith.constant 0 : index
    %1 = vector.load %arg10[%c0_1, %c0_2] : memref<8x128xf32, #tpu.memory_space<vmem>>, vector<8x128xf32>
    %c0_3 = arith.constant 0 : index
    %c0_4 = arith.constant 0 : index
    %c0_5 = arith.constant 0 : index
    %2 = vector.load %arg0[%c0_3, %c0_4, %c0_5] : memref<2x16x64xf32, #tpu.memory_space<vmem>>, vector<2x16x64xf32>
    %cst = arith.constant 0.000000e+00 : f32
    %3 = vector.broadcast %cst : f32 to vector<2x25x64xf32>
    %c0_6 = arith.constant 0 : index
    %c0_7 = arith.constant 0 : index
    %c0_8 = arith.constant 0 : index
    %4 = vector.load %arg12[%c0_6, %c0_7, %c0_8] : memref<2x25x64xf32, #tpu.memory_space<vmem>>, vector<2x25x64xf32>
    tpu.vector_store %arg12[%c0_6, %c0_7, %c0_8], %3 {strides = array<i32>} : memref<2x25x64xf32, #tpu.memory_space<vmem>>, vector<2x25x64xf32>,
    %c0_9 = arith.constant 0 : index
    %c8 = arith.constant 8 : index
    %c0_10 = arith.constant 0 : index
    %5 = vector.load %arg12[%c0_9, %c8, %c0_10] : memref<2x25x64xf32, #tpu.memory_space<vmem>>, vector<2x16x64xf32>
    tpu.vector_store %arg12[%c0_9, %c8, %c0_10], %2 {strides = array<i32>} : memref<2x25x64xf32, #tpu.memory_space<vmem>>, vector<2x16x64xf32>,
    %c0_11 = arith.constant 0 : index
    %c0_12 = arith.constant 0 : index
    %c0_13 = arith.constant 0 : index
    %6 = vector.load %arg12[%c0_11, %c0_12, %c0_13] : memref<2x25x64xf32, #tpu.memory_space<vmem>>, vector<2x25x64xf32>
    %cst_14 = arith.constant 0.000000e+00 : f32
    %7 = vector.broadcast %cst_14 : f32 to vector<32x128xf32>
    %8 = vector.extract_strided_slice %6 {offsets = [0, 7, 0], sizes = [2, 16, 64], strides = [1, 1, 1]} : vector<2x25x64xf32> to vector<2x16x64xf32>
    %9 = vector.shape_cast %8 : vector<2x16x64xf32> to vector<32x64xf32>
    %c0_15 = arith.constant 0 : index
    %c0_16 = arith.constant 0 : index
    %c0_17 = arith.constant 0 : index
    %10 = vector.load %arg1[%c0_15, %c0_16, %c0_17] : memref<3x64x128xf32, #tpu.memory_space<vmem>>, vector<1x64x128xf32>
    %11 = vector.shape_cast %10 : vector<1x64x128xf32> to vector<64x128xf32>
    %cst_18 = arith.constant dense<0.000000e+00> : vector<32x128xf32>
    %12 = tpu.matmul %9, %11, %cst_18 {dimension_numbers = #tpu.dot_dimension_numbers<[1], [0], [0], [1], [0, 0, 1, 1], [], []>} : vector<32x64xf32>, vector<64x128xf32>, vector<32x128xf32> -> vector<32x128xf32>
    %13 = arith.addf %7, %12 : vector<32x128xf32>
    %14 = vector.extract_strided_slice %6 {offsets = [0, 8, 0], sizes = [2, 16, 64], strides = [1, 1, 1]} : vector<2x25x64xf32> to vector<2x16x64xf32>
    %15 = vector.shape_cast %14 : vector<2x16x64xf32> to vector<32x64xf32>
    %c1 = arith.constant 1 : index
    %c0_19 = arith.constant 0 : index
    %c0_20 = arith.constant 0 : index
    %16 = vector.load %arg1[%c1, %c0_19, %c0_20] : memref<3x64x128xf32, #tpu.memory_space<vmem>>, vector<1x64x128xf32>
    %17 = vector.shape_cast %16 : vector<1x64x128xf32> to vector<64x128xf32>
    %cst_21 = arith.constant dense<0.000000e+00> : vector<32x128xf32>
    %18 = tpu.matmul %15, %17, %cst_21 {dimension_numbers = #tpu.dot_dimension_numbers<[1], [0], [0], [1], [0, 0, 1, 1], [], []>} : vector<32x64xf32>, vector<64x128xf32>, vector<32x128xf32> -> vector<32x128xf32>
    %19 = arith.addf %13, %18 : vector<32x128xf32>
    %20 = vector.extract_strided_slice %6 {offsets = [0, 9, 0], sizes = [2, 16, 64], strides = [1, 1, 1]} : vector<2x25x64xf32> to vector<2x16x64xf32>
    %21 = vector.shape_cast %20 : vector<2x16x64xf32> to vector<32x64xf32>
    %c2 = arith.constant 2 : index
    %c0_22 = arith.constant 0 : index
    %c0_23 = arith.constant 0 : index
    %22 = vector.load %arg1[%c2, %c0_22, %c0_23] : memref<3x64x128xf32, #tpu.memory_space<vmem>>, vector<1x64x128xf32>
    %23 = vector.shape_cast %22 : vector<1x64x128xf32> to vector<64x128xf32>
    %cst_24 = arith.constant dense<0.000000e+00> : vector<32x128xf32>
    %24 = tpu.matmul %21, %23, %cst_24 {dimension_numbers = #tpu.dot_dimension_numbers<[1], [0], [0], [1], [0, 0, 1, 1], [], []>} : vector<32x64xf32>, vector<64x128xf32>, vector<32x128xf32> -> vector<32x128xf32>
    %25 = arith.addf %19, %24 : vector<32x128xf32>
    %c0_25 = arith.constant 0 : index
    %c0_26 = arith.constant 0 : index
    %26 = vector.load %arg4[%c0_25, %c0_26] : memref<1x8xf32, #tpu.memory_space<vmem>>, vector<1x8xf32>
    %c0_27 = arith.constant 0 : index
    %c0_28 = arith.constant 0 : index
    %27 = vector.load %arg5[%c0_27, %c0_28] : memref<1x8xf32, #tpu.memory_space<vmem>>, vector<1x8xf32>
    %cst_29 = arith.constant dense<0.000000e+00> : vector<128xf32>
    %28 = vector.multi_reduction <add>, %25, %cst_29 [0] : vector<32x128xf32> to vector<128xf32>
    %29 = vector.shape_cast %28 : vector<128xf32> to vector<1x128xf32>
    %30 = arith.mulf %25, %25 : vector<32x128xf32>
    %cst_30 = arith.constant dense<0.000000e+00> : vector<128xf32>
    %31 = vector.multi_reduction <add>, %30, %cst_30 [0] : vector<32x128xf32> to vector<128xf32>
    %32 = vector.shape_cast %31 : vector<128xf32> to vector<1x128xf32>
    %cst_31 = arith.constant dense<0.000000e+00> : vector<1x8xf32>
    %33 = tpu.matmul %29, %0, %cst_31 {dimension_numbers = #tpu.dot_dimension_numbers<[1], [0], [0], [1], [0, 0, 1, 1], [], []>} : vector<1x128xf32>, vector<128x8xf32>, vector<1x8xf32> -> vector<1x8xf32>
    %cst_32 = arith.constant 0.001953125 : f32
    %34 = vector.broadcast %cst_32 : f32 to vector<1x8xf32>
    %35 = arith.mulf %33, %34 : vector<1x8xf32>
    %cst_33 = arith.constant dense<0.000000e+00> : vector<1x8xf32>
    %36 = tpu.matmul %32, %0, %cst_33 {dimension_numbers = #tpu.dot_dimension_numbers<[1], [0], [0], [1], [0, 0, 1, 1], [], []>} : vector<1x128xf32>, vector<128x8xf32>, vector<1x8xf32> -> vector<1x8xf32>
    %cst_34 = arith.constant 0.001953125 : f32
    %37 = vector.broadcast %cst_34 : f32 to vector<1x8xf32>
    %38 = arith.mulf %36, %37 : vector<1x8xf32>
    %39 = arith.mulf %35, %35 : vector<1x8xf32>
    %40 = arith.subf %38, %39 : vector<1x8xf32>
    %cst_35 = arith.constant 9.99999974E-6 : f32
    %41 = vector.broadcast %cst_35 : f32 to vector<1x8xf32>
    %42 = arith.addf %40, %41 : vector<1x8xf32>
    %43 = math.rsqrt %42 : vector<1x8xf32>
    %44 = arith.mulf %26, %43 : vector<1x8xf32>
    %45 = arith.mulf %35, %44 : vector<1x8xf32>
    %46 = arith.subf %27, %45 : vector<1x8xf32>
    %cst_36 = arith.constant dense<0.000000e+00> : vector<1x128xf32>
    %47 = tpu.matmul %44, %1, %cst_36 {dimension_numbers = #tpu.dot_dimension_numbers<[1], [0], [0], [1], [0, 0, 1, 1], [], []>} : vector<1x8xf32>, vector<8x128xf32>, vector<1x128xf32> -> vector<1x128xf32>
    %cst_37 = arith.constant dense<0.000000e+00> : vector<1x128xf32>
    %48 = tpu.matmul %46, %1, %cst_37 {dimension_numbers = #tpu.dot_dimension_numbers<[1], [0], [0], [1], [0, 0, 1, 1], [], []>} : vector<1x8xf32>, vector<8x128xf32>, vector<1x128xf32> -> vector<1x128xf32>
    %49 = vector.broadcast %47 : vector<1x128xf32> to vector<32x128xf32>
    %50 = arith.mulf %25, %49 : vector<32x128xf32>
    %51 = vector.broadcast %48 : vector<1x128xf32> to vector<32x128xf32>
    %52 = arith.addf %50, %51 : vector<32x128xf32>
    %cst_38 = arith.constant 0.000000e+00 : f32
    %53 = vector.broadcast %cst_38 : f32 to vector<32x128xf32>
    %54 = arith.maximumf %52, %53 : vector<32x128xf32>
    %55 = vector.shape_cast %54 : vector<32x128xf32> to vector<2x16x128xf32>
    %cst_39 = arith.constant 0.000000e+00 : f32
    %56 = vector.broadcast %cst_39 : f32 to vector<2x25x128xf32>
    %c0_40 = arith.constant 0 : index
    %c0_41 = arith.constant 0 : index
    %c0_42 = arith.constant 0 : index
    %57 = vector.load %arg13[%c0_40, %c0_41, %c0_42] : memref<2x25x128xf32, #tpu.memory_space<vmem>>, vector<2x25x128xf32>
    tpu.vector_store %arg13[%c0_40, %c0_41, %c0_42], %56 {strides = array<i32>} : memref<2x25x128xf32, #tpu.memory_space<vmem>>, vector<2x25x128xf32>,
    %c0_43 = arith.constant 0 : index
    %c8_44 = arith.constant 8 : index
    %c0_45 = arith.constant 0 : index
    %58 = vector.load %arg13[%c0_43, %c8_44, %c0_45] : memref<2x25x128xf32, #tpu.memory_space<vmem>>, vector<2x16x128xf32>
    tpu.vector_store %arg13[%c0_43, %c8_44, %c0_45], %55 {strides = array<i32>} : memref<2x25x128xf32, #tpu.memory_space<vmem>>, vector<2x16x128xf32>,
    %c0_46 = arith.constant 0 : index
    %c0_47 = arith.constant 0 : index
    %c0_48 = arith.constant 0 : index
    %59 = vector.load %arg13[%c0_46, %c0_47, %c0_48] : memref<2x25x128xf32, #tpu.memory_space<vmem>>, vector<2x25x128xf32>
    %cst_49 = arith.constant 0.000000e+00 : f32
    %60 = vector.broadcast %cst_49 : f32 to vector<32x128xf32>
    %61 = vector.extract_strided_slice %59 {offsets = [0, 7, 0], sizes = [2, 16, 128], strides = [1, 1, 1]} : vector<2x25x128xf32> to vector<2x16x128xf32>
    %62 = vector.shape_cast %61 : vector<2x16x128xf32> to vector<32x128xf32>
    %c0_50 = arith.constant 0 : index
    %c0_51 = arith.constant 0 : index
    %c0_52 = arith.constant 0 : index
    %63 = vector.load %arg2[%c0_50, %c0_51, %c0_52] : memref<3x128x128xf32, #tpu.memory_space<vmem>>, vector<1x128x128xf32>
    %64 = vector.shape_cast %63 : vector<1x128x128xf32> to vector<128x128xf32>
    %cst_53 = arith.constant dense<0.000000e+00> : vector<32x128xf32>
    %65 = tpu.matmul %62, %64, %cst_53 {dimension_numbers = #tpu.dot_dimension_numbers<[1], [0], [0], [1], [0, 0, 1, 1], [], []>} : vector<32x128xf32>, vector<128x128xf32>, vector<32x128xf32> -> vector<32x128xf32>
    %66 = arith.addf %60, %65 : vector<32x128xf32>
    %67 = vector.extract_strided_slice %59 {offsets = [0, 8, 0], sizes = [2, 16, 128], strides = [1, 1, 1]} : vector<2x25x128xf32> to vector<2x16x128xf32>
    %68 = vector.shape_cast %67 : vector<2x16x128xf32> to vector<32x128xf32>
    %c1_54 = arith.constant 1 : index
    %c0_55 = arith.constant 0 : index
    %c0_56 = arith.constant 0 : index
    %69 = vector.load %arg2[%c1_54, %c0_55, %c0_56] : memref<3x128x128xf32, #tpu.memory_space<vmem>>, vector<1x128x128xf32>
    %70 = vector.shape_cast %69 : vector<1x128x128xf32> to vector<128x128xf32>
    %cst_57 = arith.constant dense<0.000000e+00> : vector<32x128xf32>
    %71 = tpu.matmul %68, %70, %cst_57 {dimension_numbers = #tpu.dot_dimension_numbers<[1], [0], [0], [1], [0, 0, 1, 1], [], []>} : vector<32x128xf32>, vector<128x128xf32>, vector<32x128xf32> -> vector<32x128xf32>
    %72 = arith.addf %66, %71 : vector<32x128xf32>
    %73 = vector.extract_strided_slice %59 {offsets = [0, 9, 0], sizes = [2, 16, 128], strides = [1, 1, 1]} : vector<2x25x128xf32> to vector<2x16x128xf32>
    %74 = vector.shape_cast %73 : vector<2x16x128xf32> to vector<32x128xf32>
    %c2_58 = arith.constant 2 : index
    %c0_59 = arith.constant 0 : index
    %c0_60 = arith.constant 0 : index
    %75 = vector.load %arg2[%c2_58, %c0_59, %c0_60] : memref<3x128x128xf32, #tpu.memory_space<vmem>>, vector<1x128x128xf32>
    %76 = vector.shape_cast %75 : vector<1x128x128xf32> to vector<128x128xf32>
    %cst_61 = arith.constant dense<0.000000e+00> : vector<32x128xf32>
    %77 = tpu.matmul %74, %76, %cst_61 {dimension_numbers = #tpu.dot_dimension_numbers<[1], [0], [0], [1], [0, 0, 1, 1], [], []>} : vector<32x128xf32>, vector<128x128xf32>, vector<32x128xf32> -> vector<32x128xf32>
    %78 = arith.addf %72, %77 : vector<32x128xf32>
    %c0_62 = arith.constant 0 : index
    %c0_63 = arith.constant 0 : index
    %79 = vector.load %arg6[%c0_62, %c0_63] : memref<1x8xf32, #tpu.memory_space<vmem>>, vector<1x8xf32>
    %c0_64 = arith.constant 0 : index
    %c0_65 = arith.constant 0 : index
    %80 = vector.load %arg7[%c0_64, %c0_65] : memref<1x8xf32, #tpu.memory_space<vmem>>, vector<1x8xf32>
    %cst_66 = arith.constant dense<0.000000e+00> : vector<128xf32>
    %81 = vector.multi_reduction <add>, %78, %cst_66 [0] : vector<32x128xf32> to vector<128xf32>
    %82 = vector.shape_cast %81 : vector<128xf32> to vector<1x128xf32>
    %83 = arith.mulf %78, %78 : vector<32x128xf32>
    %cst_67 = arith.constant dense<0.000000e+00> : vector<128xf32>
    %84 = vector.multi_reduction <add>, %83, %cst_67 [0] : vector<32x128xf32> to vector<128xf32>
    %85 = vector.shape_cast %84 : vector<128xf32> to vector<1x128xf32>
    %cst_68 = arith.constant dense<0.000000e+00> : vector<1x8xf32>
    %86 = tpu.matmul %82, %0, %cst_68 {dimension_numbers = #tpu.dot_dimension_numbers<[1], [0], [0], [1], [0, 0, 1, 1], [], []>} : vector<1x128xf32>, vector<128x8xf32>, vector<1x8xf32> -> vector<1x8xf32>
    %cst_69 = arith.constant 0.001953125 : f32
    %87 = vector.broadcast %cst_69 : f32 to vector<1x8xf32>
    %88 = arith.mulf %86, %87 : vector<1x8xf32>
    %cst_70 = arith.constant dense<0.000000e+00> : vector<1x8xf32>
    %89 = tpu.matmul %85, %0, %cst_70 {dimension_numbers = #tpu.dot_dimension_numbers<[1], [0], [0], [1], [0, 0, 1, 1], [], []>} : vector<1x128xf32>, vector<128x8xf32>, vector<1x8xf32> -> vector<1x8xf32>
    %cst_71 = arith.constant 0.001953125 : f32
    %90 = vector.broadcast %cst_71 : f32 to vector<1x8xf32>
    %91 = arith.mulf %89, %90 : vector<1x8xf32>
    %92 = arith.mulf %88, %88 : vector<1x8xf32>
    %93 = arith.subf %91, %92 : vector<1x8xf32>
    %cst_72 = arith.constant 9.99999974E-6 : f32
    %94 = vector.broadcast %cst_72 : f32 to vector<1x8xf32>
    %95 = arith.addf %93, %94 : vector<1x8xf32>
    %96 = math.rsqrt %95 : vector<1x8xf32>
    %97 = arith.mulf %79, %96 : vector<1x8xf32>
    %98 = arith.mulf %88, %97 : vector<1x8xf32>
    %99 = arith.subf %80, %98 : vector<1x8xf32>
    %cst_73 = arith.constant dense<0.000000e+00> : vector<1x128xf32>
    %100 = tpu.matmul %97, %1, %cst_73 {dimension_numbers = #tpu.dot_dimension_numbers<[1], [0], [0], [1], [0, 0, 1, 1], [], []>} : vector<1x8xf32>, vector<8x128xf32>, vector<1x128xf32> -> vector<1x128xf32>
    %cst_74 = arith.constant dense<0.000000e+00> : vector<1x128xf32>
    %101 = tpu.matmul %99, %1, %cst_74 {dimension_numbers = #tpu.dot_dimension_numbers<[1], [0], [0], [1], [0, 0, 1, 1], [], []>} : vector<1x8xf32>, vector<8x128xf32>, vector<1x128xf32> -> vector<1x128xf32>
    %102 = vector.broadcast %100 : vector<1x128xf32> to vector<32x128xf32>
    %103 = arith.mulf %78, %102 : vector<32x128xf32>
    %104 = vector.broadcast %101 : vector<1x128xf32> to vector<32x128xf32>
    %105 = arith.addf %103, %104 : vector<32x128xf32>
    %106 = vector.shape_cast %2 : vector<2x16x64xf32> to vector<32x64xf32>
    %c0_75 = arith.constant 0 : index
    %c0_76 = arith.constant 0 : index
    %107 = vector.load %arg3[%c0_75, %c0_76] : memref<64x128xf32, #tpu.memory_space<vmem>>, vector<64x128xf32>
    %cst_77 = arith.constant dense<0.000000e+00> : vector<32x128xf32>
    %108 = tpu.matmul %106, %107, %cst_77 {dimension_numbers = #tpu.dot_dimension_numbers<[1], [0], [0], [1], [0, 0, 1, 1], [], []>} : vector<32x64xf32>, vector<64x128xf32>, vector<32x128xf32> -> vector<32x128xf32>
    %c0_78 = arith.constant 0 : index
    %c0_79 = arith.constant 0 : index
    %109 = vector.load %arg8[%c0_78, %c0_79] : memref<1x8xf32, #tpu.memory_space<vmem>>, vector<1x8xf32>
    %cst_80 = arith.constant dense<0.000000e+00> : vector<1x128xf32>
    %110 = tpu.matmul %109, %1, %cst_80 {dimension_numbers = #tpu.dot_dimension_numbers<[1], [0], [0], [1], [0, 0, 1, 1], [], []>} : vector<1x8xf32>, vector<8x128xf32>, vector<1x128xf32> -> vector<1x128xf32>
    %111 = vector.broadcast %110 : vector<1x128xf32> to vector<32x128xf32>
    %112 = arith.addf %108, %111 : vector<32x128xf32>
    %113 = arith.addf %105, %112 : vector<32x128xf32>
    %cst_81 = arith.constant 0.000000e+00 : f32
    %114 = vector.broadcast %cst_81 : f32 to vector<32x128xf32>
    %115 = arith.maximumf %113, %114 : vector<32x128xf32>
    %c0_82 = arith.constant 0 : index
    %c0_83 = arith.constant 0 : index
    %116 = vector.load %arg11[%c0_82, %c0_83] : memref<32x128xf32, #tpu.memory_space<vmem>>, vector<32x128xf32>
    tpu.vector_store %arg11[%c0_82, %c0_83], %115 {strides = array<i32>} : memref<32x128xf32, #tpu.memory_space<vmem>>, vector<32x128xf32>,
    return
  }
}

</mosaic_0001>

<bundles_post_ra>
// kernel: tpu_custom_call.1
= control target key start
LH: loop header
LB: loop body
LE: loop exit
PB: predicated region body
PF: predicated region fallthrough
CT: control target
= control target key end

     0   :  { %16 = vsyncpa [#allocation5], 0  ;;  %s3136_s0 = inlined_call_operand.vmem [shape: f32[2,16,64], index: 0, kind: input, shape index: {}]   ;;  %s3137_s1 = inlined_call_operand.hbm [shape: f32[3,64,128], index: 1, kind: input, shape index: {}]   ;;  %s3138_s2 = inlined_call_operand.hbm [shape: f32[3,128,128], index: 2, kind: input, shape index: {}]   ;;  %s3139_s3 = inlined_call_operand.vmem [shape: f32[64,128], index: 3, kind: input, shape index: {}]   ;;  %s3140_s4 = inlined_call_operand.vmem [shape: f32[1,8], index: 4, kind: input, shape index: {}]   ;;  %s3141_s5 = inlined_call_operand.vmem [shape: f32[1,8], index: 5, kind: input, shape index: {}]   ;;  %s3142_s6 = inlined_call_operand.vmem [shape: f32[1,8], index: 6, kind: input, shape index: {}]   ;;  %s3143_s7 = inlined_call_operand.vmem [shape: f32[1,8], index: 7, kind: input, shape index: {}]   ;;  %s3144_s8 = inlined_call_operand.vmem [shape: f32[1,8], index: 8, kind: input, shape index: {}]   ;;  %s3145_s9 = inlined_call_operand.vmem [shape: f32[128,8], index: 9, kind: input, shape index: {}]   ;;  %s3146_s10 = inlined_call_operand.vmem [shape: f32[8,128], index: 10, kind: input, shape index: {}]   ;;  %s3147_s11 = inlined_call_operand.hbm [shape: f32[32,128], index: 11, kind: output, shape index: {}]  }
   0x1   :  { %17 = vsyncpa [#allocation8], 0 }
   0x2   :  { %18 = vsyncpa [#allocation6], 0  ;;  %s2632_s17 = smov [#allocation4]   ;;  %s2560_s21 = scalar_lea.hbm %s3137_s1, 3072 }
   0x3   :  { %s26_s18 = sshll.u32 %s2632_s17, 4  ;;  %p2561_p0 = scmp.ne.s32.totalorder %s3137_s1, %s2560_s21  ;;  %s27_s18 = int_to_ptr.vmem [resolvable:$true] %s26_s18 }
   0x4   :  { %p2564_p1 = scmp.lt.u32.totalorder %s2560_s21, %s3137_s1 }
   0x6   :  { %p2566_p2 = pnand %p2564_p1, %p2561_p0 }
   0x8   :  { %2569 = shalt.err (!%p2566_p2)
}
   0x9   :  { %s2570_s26 = scalar_lea.vmem %s27_s18, 3072  ;;  %p2575_p4 = scmp.lt.s32.totalorder %s27_s18, %s27_s18 }
   0xa   :  { %p2571_p3 = scmp.ne.s32.totalorder %s27_s18, %s2570_s26  ;;  %p2576_p5 = scmp.lt.s32.totalorder %s2570_s26, %s2570_s26 }
   0xc   :  { %p2577_p6 = por %p2576_p5, %p2575_p4 }
   0xe   :  { %p2578_p7 = pnand %p2577_p6, %p2571_p3 }
  0x10   :  { %2581 = shalt.err (!%p2578_p7)
}
  0x11   :  { %s2633_s27 = smov 128   ;;  %s2634_s28 = smov 8  }
  0x12   :  { %32 = dma.hbm_to_vmem [thread:$0]  %s3137_s1, 3072, %s27_s18, [#allocation5], %s2633_s27, %s2633_s27, %s2634_s28  }
  0x13   :  { %s2635_s12 = smov [#allocation7]   ;;  %s2582_s16 = scalar_lea.hbm %s3138_s2, 6144 }
  0x14   :  { %s38_s13 = sshll.u32 %s2635_s12, 4  ;;  %p2583_p8 = scmp.ne.s32.totalorder %s3138_s2, %s2582_s16  ;;  %s39_s13 = int_to_ptr.vmem [resolvable:$true] %s38_s13 }
  0x15   :  { %p2586_p9 = scmp.lt.u32.totalorder %s2582_s16, %s3138_s2 }
  0x17   :  { %p2588_p10 = pnand %p2586_p9, %p2583_p8 }
  0x19   :  { %2591 = shalt.err (!%p2588_p10)
}
  0x1a   :  { %s2592_s22 = scalar_lea.vmem %s39_s13, 6144  ;;  %p2597_p12 = scmp.lt.s32.totalorder %s39_s13, %s39_s13 }
  0x1b   :  { %p2593_p11 = scmp.ne.s32.totalorder %s39_s13, %s2592_s22  ;;  %p2598_p13 = scmp.lt.s32.totalorder %s2592_s22, %s2592_s22 }
  0x1d   :  { %p2599_p0 = por %p2598_p13, %p2597_p12 }
  0x1f   :  { %p2600_p1 = pnand %p2599_p0, %p2593_p11 }
  0x21   :  { %2603 = shalt.err (!%p2600_p1)
}
  0x22   :  { %44 = dma.hbm_to_vmem [thread:$0]  %s3138_s2, 6144, %s39_s13, [#allocation8], %s2633_s27, %s2633_s27, %s2634_s28  }
  0x23   :  { %2626 = dma.done.wait [#allocation5], 3072  }
  0x24   :  { %2627 = vsyncadd [#allocation5], 4294964224 }
  0x25   :  { %2628 = dma.done.wait [#allocation8], 6144  }
  0x26   :  { %2629 = vsyncadd [#allocation8], 4294961152  ;;  %vm88_vm0 = vcmask 523264   ;;  %v2636_v0 = vmov 0.0   ;;  %vm92_vm1 = vcmask 516096   ;;  %v2637_v1 = vmov 0.0|0.0  }
  0x27   :  { %90 = vst.msk [vmem:[#allocation2 + $0x8] sm:$0xff] %vm88_vm0, %v2636_v0  ;;  %89 = vst.msk [vmem:[#allocation2] sm:$0xff] %vm88_vm0, %v2636_v0  ;;  %2324 = vmatprep.subr.bf16.mxu1 %v2637_v1  ;;  %v136_v2 = vld [vmem:[#allocation4 + $0x40] sm:$0xff]  ;;  %v137_v3 = vld [vmem:[#allocation4 + $0x48] sm:$0xff]  ;;  %vm116_vm2 = vcmask 1040384   ;;  %vm332_vm3 = vcmask 1046528  }
  0x28   :  { %91 = vst.msk [vmem:[#allocation2 + $0x10] sm:$0xff] %vm88_vm0, %v2636_v0  ;;  %94 = vst.msk [vmem:[#allocation2 + $0x20] sm:$0xff] %vm88_vm0, %v2636_v0  ;;  %v138_v4 = vld [vmem:[#allocation4 + $0x50] sm:$0xff]  ;;  %v2276_v5 = vpack.c.bf16 %v137_v3, %v136_v2  ;;  %v139_v6 = vld [vmem:[#allocation4 + $0x58] sm:$0xff]  ;;  %vm2638_vm4 = vmmov 0   ;;  %vm622_vm5 = vcmask 64512  }
  0x29   :  { %95 = vst.msk [vmem:[#allocation2 + $0x28] sm:$0xff] %vm88_vm0, %v2636_v0  ;;  %96 = vst.msk [vmem:[#allocation2 + $0x30] sm:$0xff] %vm88_vm0, %v2636_v0  ;;  %v2280_v7 = vpack.c.bf16 %v139_v6, %v138_v4  ;;  %v140_v8 = vld [vmem:[#allocation4 + $0x60] sm:$0xff]  ;;  %v141_v9 = vld [vmem:[#allocation4 + $0x68] sm:$0xff]  ;;  %2007 = vmatprep.mubr.msk.f32.mxu1 %vm2638_vm4, %v2636_v0 }
  0x2a   :  { %792 = vst [vmem:[#allocation3 + $0x18] sm:$0x1] %v2636_v0  ;;  %796 = vst [vmem:[#allocation3 + $0x38] sm:$0x1] %v2636_v0  ;;  %v2750_v10 = vld [vmem:[%s3136_s0] sm:$0xff]  ;;  %2277 = vmatprep.subr.bf16.mxu0 %v2276_v5  ;;  %v2757_v11 = vld [vmem:[%s3136_s0 + $0x8] sm:$0xff]  ;;  %v2284_v12 = vpack.c.bf16 %v141_v9, %v140_v8 }
  0x2b   :  { %93 = vst.msk [vmem:[#allocation2 + $0x18] sm:$0x1] %vm92_vm1, %v2636_v0  ;;  %97 = vst.msk [vmem:[#allocation2 + $0x38] sm:$0x1] %vm92_vm1, %v2636_v0  ;;  %2279 = vmatpush3.bf16.msra.mxu0 %v2276_v5  ;;  %v2764_v13 = vld [vmem:[%s3136_s0 + $0x10] sm:$0xff]  ;;  %v143_v15 = vld [vmem:[#allocation4 + $0x78] sm:$0xff] }
  0x2c   :  { %98 = vst.msk [vmem:[#allocation2 + $0x8] sm:$0xff] %vm88_vm0, %v2750_v10  ;;  %99 = vst.msk [vmem:[#allocation2 + $0x10] sm:$0xff] %vm88_vm0, %v2757_v11  ;;  %2281 = vmatprep.subr.bf16.mxu0 %v2280_v7  ;;  %v142_v14 = vld [vmem:[#allocation4 + $0x70] sm:$0xff]  ;;  %v2771_v16 = vld [vmem:[%s3136_s0 + $0x18] sm:$0xff] }
  0x2d   :  { %100 = vst.msk [vmem:[#allocation2 + $0x28] sm:$0xff] %vm88_vm0, %v2764_v13  ;;  %101 = vst.msk [vmem:[#allocation2 + $0x30] sm:$0xff] %vm88_vm0, %v2771_v16  ;;  %v2288_v17 = vpack.c.bf16 %v143_v15, %v142_v14  ;;  %v127_v19 = vld [vmem:[#allocation4] sm:$0xff]  ;;  %v128_v20 = vld [vmem:[#allocation4 + $0x8] sm:$0xff] }
  0x2e   :  { %v67_v21 = vld [vmem:[%s3145_s9] sm:$0xff]  ;;  %v68_v22 = vld [vmem:[%s3145_s9 + $0x8] sm:$0xff]  ;;  %v69_v23 = vld [vmem:[%s3145_s9 + $0x10] sm:$0xff]  ;;  %v2292_v25 = vpack.c.bf16 %v128_v20, %v127_v19 }
  0x2f   :  { %2283 = vmatpush3.bf16.msra.mxu0 %v2280_v7  ;;  %v70_v24 = vld [vmem:[%s3145_s9 + $0x18] sm:$0xff]  ;;  %v2791_v26 = vpack.c.bf16 %v68_v22, %v67_v21  ;;  %v129_v27 = vld [vmem:[#allocation4 + $0x10] sm:$0xff]  ;;  %v102_v29 = vld [vmem:[#allocation2] sm:$0xff] }
  0x30   :  { %2285 = vmatprep.subr.bf16.mxu0 %v2284_v12  ;;  %v130_v28 = vld [vmem:[#allocation4 + $0x18] sm:$0xff]  ;;  %v2794_v30 = vpack.c.bf16 %v70_v24, %v69_v23  ;;  %v71_v32 = vld [vmem:[%s3145_s9 + $0x20] sm:$0xff]  ;;  %v72_v33 = vld [vmem:[%s3145_s9 + $0x28] sm:$0xff]  ;;  %v117_v37 = vrot.slane %v102_v29, 7 }
  0x31   :  { %2326 = vmatpush3.bf16.msra.mxu1 %v2791_v26  ;;  %v2296_v35 = vpack.c.bf16 %v130_v28, %v129_v27  ;;  %v131_v38 = vld [vmem:[#allocation4 + $0x20] sm:$0xff]  ;;  %v132_v39 = vld [vmem:[#allocation4 + $0x28] sm:$0xff]  ;;  %v2811_v40 = vpack.c.bf16 %v72_v33, %v71_v32  ;;  %v133_v44 = vld [vmem:[#allocation4 + $0x30] sm:$0xff] }
  0x32   :  { %2327 = vmatprep.subr.bf16.mxu1 %v2637_v1  ;;  %v2300_v42 = vpack.c.bf16 %v132_v39, %v131_v38  ;;  %v134_v45 = vld [vmem:[#allocation4 + $0x38] sm:$0xff]  ;;  %v344_v47 = vld [vmem:[#allocation4 + $0x80] sm:$0xff]  ;;  %v345_v48 = vld [vmem:[#allocation4 + $0x88] sm:$0xff] }
  0x33   :  { %v2775_v18 = vld [vmem:[#allocation2 + $0x8] sm:$0xff]  ;;  %2287 = vmatpush3.bf16.msra.mxu0 %v2284_v12  ;;  %v2796_v31 = vld [vmem:[#allocation2 + $0x10] sm:$0xff]  ;;  %v2304_v46 = vpack.c.bf16 %v134_v45, %v133_v44  ;;  %v106_v49 = vld [vmem:[#allocation2 + $0x20] sm:$0xff]  ;;  %v2308_v52 = vpack.c.bf16 %v345_v48, %v344_v47 }
  0x34   :  { %1925 = vmatprep.mubr.msk.f32.mxu0 %vm88_vm0, %v2775_v18  ;;  %2289 = vmatprep.subr.bf16.mxu0 %v2288_v17  ;;  %v118_v34 = vrot.slane %v2775_v18, 7  ;;  %v2806_v36 = vld [vmem:[#allocation2 + $0x28] sm:$0xff]  ;;  %v2815_v41 = vld [vmem:[#allocation2 + $0x30] sm:$0xff]  ;;  %v120_v50 = vrot.slane %v2796_v31, 7  ;;  %v122_v53 = vrot.slane %v106_v49, 7  ;;  %v347_v55 = vld [vmem:[#allocation4 + $0x98] sm:$0xff] }
  0x35   :  { %2329 = vmatpush3.bf16.msra.mxu1 %v2794_v30  ;;  %v123_v51 = vrot.slane %v2806_v36, 7  ;;  %v346_v54 = vld [vmem:[#allocation4 + $0x90] sm:$0xff]  ;;  %v125_v56 = vrot.slane %v2815_v41, 7  ;;  %v333_v58 = vrot.slane %v2775_v18, 1  ;;  %v334_v59 = vrot.slane %v2796_v31, 1  ;;  %v348_v62 = vld [vmem:[#allocation4 + $0xa0] sm:$0xff] }
  0x36   :  { %v119_v43 = vsel %vm116_vm2, %v117_v37, %v118_v34  ;;  %2330 = vmatprep.subr.bf16.mxu1 %v2637_v1  ;;  %v121_v57 = vsel %vm116_vm2, %v118_v34, %v120_v50  ;;  %v2312_v60 = vpack.c.bf16 %v347_v55, %v346_v54  ;;  %v349_v63 = vld [vmem:[#allocation4 + $0xa8] sm:$0xff]  ;;  %v350_v5 = vld [vmem:[#allocation4 + $0xb0] sm:$0xff]  ;;  %v351_v6 = vld [vmem:[#allocation4 + $0xb8] sm:$0xff]  ;;  %v338_v12 = vrot.slane %v2806_v36, 1 }
  0x37   :  { %2291 = vmatpush3.bf16.msra.mxu0 %v2288_v17  ;;  %v124_v61 = vsel %vm116_vm2, %v122_v53, %v123_v51  ;;  %v126_v2 = vsel %vm116_vm2, %v123_v51, %v125_v56  ;;  %v2316_v3 = vpack.c.bf16 %v349_v63, %v348_v62  ;;  %v335_v4 = vsel %vm332_vm3, %v333_v58, %v334_v59  ;;  %v105_v8 = vld [vmem:[#allocation2 + $0x18] sm:$0x1]  ;;  %v73_v21 = vld [vmem:[%s3145_s9 + $0x30] sm:$0xff]  ;;  %v75_v24 = vld [vmem:[%s3145_s9 + $0x40] sm:$0xff] }
  0x38   :  { %2293 = vmatprep.subr.bf16.mxu0 %v2292_v25  ;;  %v2320_v7 = vpack.c.bf16 %v351_v6, %v350_v5  ;;  %v336_v9 = vrot.slane %v105_v8, 1  ;;  %v339_v14 = vrot.slane %v2815_v41, 1  ;;  %v109_v15 = vld [vmem:[#allocation2 + $0x38] sm:$0x1]  ;;  %v77_v28 = vld [vmem:[%s3145_s9 + $0x50] sm:$0xff]  ;;  %v79_v32 = vld [vmem:[%s3145_s9 + $0x60] sm:$0xff] }
  0x39   :  { %2332 = vmatpush3.bf16.msra.mxu1 %v2811_v40  ;;  %v341_v18 = vrot.slane %v109_v15, 1  ;;  %v74_v22 = vld [vmem:[%s3145_s9 + $0x38] sm:$0xff]  ;;  %v80_v33 = vld [vmem:[%s3145_s9 + $0x68] sm:$0xff] }
  0x3a   :  { %1926 = vmatmul.mubr.msk.f32.vlgmr.msra.gmra.mrb[0].mxu0 %vm88_vm0, %v2796_v31  ;;  %2333 = vmatprep.subr.bf16.mxu1 %v2637_v1  ;;  %v337_v17 = vsel %vm332_vm3, %v334_v59, %v336_v9  ;;  %v340_v19 = vsel %vm332_vm3, %v338_v12, %v339_v14  ;;  %v2852_v23 = vpack.c.bf16 %v74_v22, %v73_v21  ;;  %v78_v29 = vld [vmem:[%s3145_s9 + $0x58] sm:$0xff] }
  0x3b   :  { %2295 = vmatpush3.bf16.msra.mxu0 %v2292_v25  ;;  %1928 = vmatprep.mubr.msk.f32.mxu0 %vm88_vm0, %v2806_v36  ;;  %v342_v20 = vsel %vm332_vm3, %v339_v14, %v341_v18  ;;  %v76_v25 = vld [vmem:[%s3145_s9 + $0x48] sm:$0xff]  ;;  %v2872_v31 = vpack.c.bf16 %v78_v29, %v77_v28  ;;  %v2882_v34 = vpack.c.bf16 %v80_v33, %v79_v32  ;;  %v82_v36 = vld [vmem:[%s3145_s9 + $0x78] sm:$0xff]  ;;  %v846_v18 = vld [vmem:[#allocation7 + $0x80] sm:$0xff] }
  0x3c   :  { %2297 = vmatprep.subr.bf16.mxu0 %v2296_v35  ;;  %v2862_v27 = vpack.c.bf16 %v76_v25, %v75_v24  ;;  %v450_v24 = vld [vmem:[%s3141_s5] sm:$0x1]  ;;  %v848_v25 = vld [vmem:[#allocation7 + $0x90] sm:$0xff]  ;;  %v849_v28 = vld [vmem:[#allocation7 + $0x98] sm:$0xff] }
  0x3d   :  { %2335 = vmatpush3.bf16.msra.mxu1 %v2852_v23  ;;  %v2376_v33 = vpack.c.bf16 %v849_v28, %v848_v25 }
  0x3e   :  { %1929 = vmatmul.mubr.msk.f32.gmra.mrb[2].mxu0 %vm88_vm0, %v2815_v41  ;;  %2336 = vmatprep.subr.bf16.mxu1 %v2637_v1 }
  0x3f   :  { %2299 = vmatpush3.bf16.msra.mxu0 %v2296_v35  ;;  %1947 = vmatprep.mubr.msk.f32.mxu0 %vm88_vm0, %v119_v43  ;;  %v81_v35 = vld [vmem:[%s3145_s9 + $0x70] sm:$0xff] }
  0x40   :  { %2301 = vmatprep.subr.bf16.mxu0 %v2300_v42  ;;  %v2892_v37 = vpack.c.bf16 %v82_v36, %v81_v35  ;;  %v850_v35 = vld [vmem:[#allocation7 + $0xa0] sm:$0xff]  ;;  %v851_v36 = vld [vmem:[#allocation7 + $0xa8] sm:$0xff] }
  0x41   :  { %2338 = vmatpush3.bf16.msra.mxu1 %v2862_v27 }
  0x42   :  { %2339 = vmatprep.subr.bf16.mxu1 %v2637_v1 }
  0x43   :  { %2303 = vmatpush3.bf16.msra.mxu0 %v2300_v42 }
  0x44   :  { %2305 = vmatprep.subr.bf16.mxu0 %v2304_v46 }
  0x45   :  { %2341 = vmatpush3.bf16.msra.mxu1 %v2872_v31 }
  0x46   :  { %2342 = vmatprep.subr.bf16.mxu1 %v2637_v1 }
  0x47   :  { %2307 = vmatpush3.bf16.msra.mxu0 %v2304_v46 }
  0x48   :  { %2309 = vmatprep.subr.bf16.mxu0 %v2308_v52 }
  0x49   :  { %2344 = vmatpush3.bf16.msra.mxu1 %v2882_v34 }
  0x4a   :  { %1948 = vmatmul.mubr.msk.f32.vlgmr.msra.gmra.mrb[0].mxu0 %vm88_vm0, %v121_v57  ;;  %2345 = vmatprep.subr.bf16.mxu1 %v2637_v1 }
  0x4b   :  { %2311 = vmatpush3.bf16.msra.mxu0 %v2308_v52  ;;  %1950 = vmatprep.mubr.msk.f32.mxu0 %vm88_vm0, %v124_v61 }
  0x4c   :  { %2313 = vmatprep.subr.bf16.mxu0 %v2312_v60 }
  0x4d   :  { %2347 = vmatpush3.bf16.msra.mxu1 %v2892_v37 }
  0x4e   :  { %1951 = vmatmul.mubr.msk.f32.gmra.mrb[2].mxu0 %vm88_vm0, %v126_v2  ;;  %2348 = vmatprep.subr.bf16.mxu1 %v2637_v1 }
  0x4f   :  { %2315 = vmatpush3.bf16.msra.mxu0 %v2312_v60  ;;  %1969 = vmatprep.mubr.msk.f32.mxu0 %vm88_vm0, %v335_v4 }
  0x50   :  { %2317 = vmatprep.subr.bf16.mxu0 %v2316_v3 }
  0x53   :  { %2319 = vmatpush3.bf16.msra.mxu0 %v2316_v3  ;;  %v2959_v3 = vld [vmem:[%s3146_s10] sm:$0xff] }
  0x54   :  { %2321 = vmatprep.subr.bf16.mxu0 %v2320_v7 }
  0x57   :  { %2323 = vmatpush3.bf16.msra.mxu0 %v2320_v7 }
  0x58   :  { %2045 = vmatprep.subr.mxu0 %v2636_v0 }
  0x5a   :  { %1970 = vmatmul.mubr.msk.f32.vlgmr.msra.gmra.mrb[0].mxu0 %vm88_vm0, %v337_v17  ;;  %v449_v17 = vld [vmem:[%s3140_s4] sm:$0x1] }
  0x5b   :  { %1972 = vmatprep.mubr.msk.f32.mxu0 %vm88_vm0, %v340_v19  ;;  %2046 = vmatpush3.msra.mxu0 %v2959_v3  ;;  %v847_v19 = vld [vmem:[#allocation7 + $0x88] sm:$0xff] }
  0x5c   :  { %2050 = vmatprep.subr.mxu0 %v2636_v0  ;;  %v2372_v22 = vpack.c.bf16 %v847_v19, %v846_v18 }
  0x5e   :  { %1973 = vmatmul.mubr.msk.f32.gmra.mrb[2].mxu0 %vm88_vm0, %v342_v20 }
  0x5f   :  { %2047 = vmatprep.mubr.msk.f32.mxu0 %vm2638_vm4, %v2636_v0 }
 0x12d   :  { %v2900_v38 = vpop.f32.mrb[0].mxu0 }
 0x12e   :  { %v461_v39 = vmul.f32 %v2900_v38, %v2900_v38  ;;  %v2904_v41 = vpop.f32.mrb[1].mxu0 }
 0x12f   :  { %v451_v42 = vadd.f32 %v2900_v38, %v2904_v41  ;;  %v460_v43 = vmul.f32 %v2904_v41, %v2904_v41 }
 0x131   :  { %v464_v44 = vadd.f32 %v461_v39, %v460_v43  ;;  %v2910_v45 = vpop.f32.mrb[2].mxu0  ;;  %v2380_v39 = vpack.c.bf16 %v851_v36, %v850_v35  ;;  %v853_v43 = vld [vmem:[#allocation7 + $0xb8] sm:$0xff]  ;;  %v833_v36 = vld [vmem:[#allocation7 + $0x20] sm:$0xff] }
 0x132   :  { %v2912_v46 = vpop.f32.mrb[3].mxu0  ;;  %v463_v49 = vmul.f32 %v2910_v45, %v2910_v45 }
 0x133   :  { %v452_v47 = vadd.f32 %v451_v42, %v2912_v46  ;;  %v462_v48 = vmul.f32 %v2912_v46, %v2912_v46  ;;  %v852_v42 = vld [vmem:[#allocation7 + $0xb0] sm:$0xff] }
 0x135   :  { %v453_v50 = vadd.f32 %v2910_v45, %v452_v47  ;;  %v465_v51 = vadd.f32 %v464_v44, %v462_v48  ;;  %v2384_v44 = vpack.c.bf16 %v853_v43, %v852_v42  ;;  %v854_v47 = vld [vmem:[#allocation7 + $0xc0] sm:$0xff]  ;;  %v855_v48 = vld [vmem:[#allocation7 + $0xc8] sm:$0xff] }
 0x137   :  { %v454_v52 = vrot.slane %v453_v50, 4  ;;  %v466_v53 = vadd.f32 %v465_v51, %v463_v49  ;;  %v2388_v49 = vpack.c.bf16 %v855_v48, %v854_v47  ;;  %v857_v51 = vld [vmem:[#allocation7 + $0xd8] sm:$0xff] }
 0x139   :  { %v455_v54 = vadd.f32 %v454_v52, %v453_v50  ;;  %v467_v59 = vrot.slane %v466_v53, 4  ;;  %v856_v50 = vld [vmem:[#allocation7 + $0xd0] sm:$0xff] }
 0x13a   :  { %v2392_v52 = vpack.c.bf16 %v857_v51, %v856_v50 }
 0x13b   :  { %v456_v55 = vrot.slane %v455_v54, 2  ;;  %v468_v60 = vadd.f32 %v467_v59, %v466_v53  ;;  %v858_v53 = vld [vmem:[#allocation7 + $0xe0] sm:$0xff] }
 0x13c   :  { %v829_v59 = vld [vmem:[#allocation7] sm:$0xff] }
 0x13d   :  { %v457_v56 = vadd.f32 %v456_v55, %v455_v54  ;;  %v469_v61 = vrot.slane %v468_v60, 2  ;;  %v859_v54 = vld [vmem:[#allocation7 + $0xe8] sm:$0xff] }
 0x13e   :  { %v2396_v55 = vpack.c.bf16 %v859_v54, %v858_v53  ;;  %v835_v53 = vld [vmem:[#allocation7 + $0x30] sm:$0xff]  ;;  %v836_v54 = vld [vmem:[#allocation7 + $0x38] sm:$0xff] }
 0x13f   :  { %v458_v57 = vrot.slane %v457_v56, 1  ;;  %v470_v62 = vadd.f32 %v469_v61, %v468_v60  ;;  %v830_v60 = vld [vmem:[#allocation7 + $0x8] sm:$0xff] }
 0x140   :  { %v2404_v61 = vpack.c.bf16 %v830_v60, %v829_v59  ;;  %v839_v60 = vld [vmem:[#allocation7 + $0x50] sm:$0xff] }
 0x141   :  { %v459_v58 = vadd.f32 %v458_v57, %v457_v56  ;;  %v471_v63 = vrot.slane %v470_v62, 1  ;;  %v860_v56 = vld [vmem:[#allocation7 + $0xf0] sm:$0xff]  ;;  %v861_v57 = vld [vmem:[#allocation7 + $0xf8] sm:$0xff] }
 0x143   :  { %2008 = vmatmul.mubr.f32.vlgmr.msra.gmra.mrb[0].mxu1 %v459_v58  ;;  %v472_v2 = vadd.f32 %v471_v63, %v470_v62  ;;  %v2400_v58 = vpack.c.bf16 %v861_v57, %v860_v56  ;;  %v769_v62 = vlaneseq  ;;  %v2416_v56 = vpack.c.bf16 %v836_v54, %v835_v53  ;;  %v837_v57 = vld [vmem:[#allocation7 + $0x40] sm:$0xff]  ;;  %v808_v53 = vld [vmem:[#allocation3 + $0x38] sm:$0x1] }
 0x144   :  { %2350 = vmatpush3.bf16.msra.mxu1 %v2791_v26  ;;  %2042 = vmatprep.mubr.msk.f32.mxu1 %vm2638_vm4, %v2636_v0 }
 0x145   :  { %2351 = vmatprep.subr.bf16.mxu1 %v2637_v1  ;;  %v770_v63 = vshrl.u32 %v769_v62, 7 }
 0x148   :  { %2353 = vmatpush3.bf16.msra.mxu1 %v2794_v30 }
 0x149   :  { %2354 = vmatprep.subr.bf16.mxu1 %v2637_v1 }
 0x14c   :  { %2356 = vmatpush3.bf16.msra.mxu1 %v2811_v40 }
 0x14d   :  { %2357 = vmatprep.subr.bf16.mxu1 %v2637_v1 }
 0x150   :  { %2359 = vmatpush3.bf16.msra.mxu1 %v2852_v23 }
 0x151   :  { %2360 = vmatprep.subr.bf16.mxu1 %v2637_v1 }
 0x154   :  { %2362 = vmatpush3.bf16.msra.mxu1 %v2862_v27 }
 0x155   :  { %2363 = vmatprep.subr.bf16.mxu1 %v2637_v1 }
 0x158   :  { %2365 = vmatpush3.bf16.msra.mxu1 %v2872_v31 }
 0x159   :  { %2366 = vmatprep.subr.bf16.mxu1 %v2637_v1 }
 0x15c   :  { %2368 = vmatpush3.bf16.msra.mxu1 %v2882_v34 }
 0x15d   :  { %2369 = vmatprep.subr.bf16.mxu1 %v2637_v1 }
 0x160   :  { %2371 = vmatpush3.bf16.msra.mxu1 %v2892_v37 }
 0x161   :  { %2468 = vmatprep.subr.bf16.mxu1 %v2637_v1 }
 0x163   :  { %2043 = vmatmul.mubr.f32.vlgmr.msra.gmra.mrb[2].mxu1 %v472_v2  ;;  %v2974_v2 = vsub.s32 0, %v770_v63  ;;  %v841_v63 = vld [vmem:[#allocation7 + $0x60] sm:$0xff] }
 0x164   :  { %2470 = vmatpush3.bf16.msra.mxu1 %v2791_v26  ;;  %2201 = vmatprep.mubr.msk.f32.mxu1 %vm2638_vm4, %v2636_v0 }
 0x165   :  { %2471 = vmatprep.subr.bf16.mxu1 %v2637_v1 }
 0x168   :  { %2473 = vmatpush3.bf16.msra.mxu1 %v2794_v30 }
 0x169   :  { %2474 = vmatprep.subr.bf16.mxu1 %v2637_v1 }
 0x16c   :  { %2476 = vmatpush3.bf16.msra.mxu1 %v2811_v40 }
 0x16d   :  { %2477 = vmatprep.subr.bf16.mxu1 %v2637_v1 }
 0x170   :  { %2479 = vmatpush3.bf16.msra.mxu1 %v2852_v23 }
 0x171   :  { %2480 = vmatprep.subr.bf16.mxu1 %v2637_v1 }
 0x174   :  { %2482 = vmatpush3.bf16.msra.mxu1 %v2862_v27 }
 0x175   :  { %2483 = vmatprep.subr.bf16.mxu1 %v2637_v1 }
 0x178   :  { %2485 = vmatpush3.bf16.msra.mxu1 %v2872_v31 }
 0x179   :  { %2486 = vmatprep.subr.bf16.mxu1 %v2637_v1 }
 0x17c   :  { %2488 = vmatpush3.bf16.msra.mxu1 %v2882_v34 }
 0x17d   :  { %2489 = vmatprep.subr.bf16.mxu1 %v2637_v1 }
 0x180   :  { %2491 = vmatpush3.bf16.msra.mxu1 %v2892_v37 }
 0x181   :  { %2492 = vmatprep.subr.bf16.mxu1 %v2637_v1 }
 0x216   :  { %v539_v4 = vpop.f32.mrb[0].mxu1 }
 0x217   :  { %v2009_v5 = vpop.f32.mrb[1].mxu1  ;;  %v543_v6 = vmul.f32 0.001953125, %v539_v4 }
 0x219   :  { %v615_v8 = vmul.f32 %v543_v6, %v543_v6 }
 0x236   :  { %v610_v7 = vpop.f32.mrb[2].mxu1 }
 0x237   :  { %v614_v9 = vmul.f32 0.001953125, %v610_v7  ;;  %v2044_v12 = vpop.f32.mrb[3].mxu1 }
 0x239   :  { %v616_v14 = vsub.f32 %v614_v9, %v615_v8 }
 0x23b   :  { %v617_v15 = vadd.f32 1e-05, %v616_v14 }
 0x23d   :  { %2556 = vrsqrt.f32 %v617_v15 }
 0x247   :  { %v2557_v20 = vpop.eup %2556 }
 0x248   :  { %v619_v21 = vmul.f32 %v2557_v20, %v449_v17 }
 0x24a   :  { %2048 = vmatmul.mubr.msk.f32.vlgmr.msra.gmra.mrb[4].mxu0 %vm622_vm5, %v619_v21  ;;  %v620_v29 = vmul.f32 %v619_v21, %v543_v6 }
 0x24b   :  { %2051 = vmatpush3.msra.mxu0 %v2959_v3  ;;  %2052 = vmatprep.mubr.msk.f32.mxu0 %vm2638_vm4, %v2636_v0 }
 0x24c   :  { %v621_v32 = vsub.f32 %v450_v24, %v620_v29  ;;  %2373 = vmatprep.subr.bf16.mxu0 %v2372_v22  ;;  %v832_v24 = vld [vmem:[#allocation7 + $0x18] sm:$0xff] }
 0x24e   :  { %2053 = vmatmul.mubr.msk.f32.vlgmr.msra.gmra.mrb[6].mxu0 %vm622_vm5, %v621_v32 }
 0x24f   :  { %2375 = vmatpush3.bf16.msra.mxu0 %v2372_v22  ;;  %v831_v22 = vld [vmem:[#allocation7 + $0x10] sm:$0xff] }
 0x250   :  { %2377 = vmatprep.subr.bf16.mxu0 %v2376_v33 }
 0x253   :  { %2379 = vmatpush3.bf16.msra.mxu0 %v2376_v33 }
 0x254   :  { %2381 = vmatprep.subr.bf16.mxu0 %v2380_v39 }
 0x257   :  { %2383 = vmatpush3.bf16.msra.mxu0 %v2380_v39  ;;  %v834_v39 = vld [vmem:[#allocation7 + $0x28] sm:$0xff] }
 0x258   :  { %2385 = vmatprep.subr.bf16.mxu0 %v2384_v44  ;;  %v2412_v50 = vpack.c.bf16 %v834_v39, %v833_v36  ;;  %v1060_v36 = vld [vmem:[#allocation7 + $0x158] sm:$0xff]  ;;  %v1061_v39 = vld [vmem:[#allocation7 + $0x160] sm:$0xff] }
 0x25b   :  { %2387 = vmatpush3.bf16.msra.mxu0 %v2384_v44 }
 0x25c   :  { %2389 = vmatprep.subr.bf16.mxu0 %v2388_v49 }
 0x25f   :  { %2391 = vmatpush3.bf16.msra.mxu0 %v2388_v49 }
 0x260   :  { %2393 = vmatprep.subr.bf16.mxu0 %v2392_v52 }
 0x263   :  { %2395 = vmatpush3.bf16.msra.mxu0 %v2392_v52 }
 0x264   :  { %2397 = vmatprep.subr.bf16.mxu0 %v2396_v55 }
 0x267   :  { %2399 = vmatpush3.bf16.msra.mxu0 %v2396_v55 }
 0x268   :  { %2401 = vmatprep.subr.bf16.mxu0 %v2400_v58 }
 0x26b   :  { %2403 = vmatpush3.bf16.msra.mxu0 %v2400_v58  ;;  %v838_v58 = vld [vmem:[#allocation7 + $0x48] sm:$0xff] }
 0x26c   :  { %2405 = vmatprep.subr.bf16.mxu0 %v2404_v61  ;;  %v2420_v59 = vpack.c.bf16 %v838_v58, %v837_v57 }
 0x31d   :  { %v692_v4 = vpop.f32.mrb[4].mxu0 }
 0x31e   :  { %v772_v5 = vrot.slane %v692_v4, %v2974_v2  ;;  %v2049_v6 = vpop.f32.mrb[5].mxu0  ;;  %v842_v4 = vld [vmem:[#allocation7 + $0x68] sm:$0xff] }
 0x31f   :  { %v843_v6 = vld [vmem:[#allocation7 + $0x70] sm:$0xff] }
 0x320   :  { %v773_v7 = vmul.f32 %v772_v5, %v2904_v41  ;;  %v774_v8 = vmul.f32 %v2900_v38, %v772_v5  ;;  %v775_v9 = vmul.f32 %v772_v5, %v2912_v46  ;;  %v776_v12 = vmul.f32 %v2910_v45, %v772_v5 }
 0x321   :  { %v765_v14 = vpop.f32.mrb[6].mxu0  ;;  %v2408_v46 = vpack.c.bf16 %v832_v24, %v831_v22  ;;  %v2989_v45 = vrot.slane %v2636_v0, 7  ;;  %v2428_v5 = vpack.c.bf16 %v842_v4, %v841_v63  ;;  %v1055_v24 = vld [vmem:[#allocation7 + $0x130] sm:$0xff] }
 0x322   :  { %v780_v15 = vrot.slane %v765_v14, %v2974_v2  ;;  %v2054_v17 = vpop.f32.mrb[7].mxu0 }
 0x323   :  { %v1052_v17 = vld [vmem:[#allocation7 + $0x118] sm:$0xff] }
 0x324   :  { %v781_v18 = vadd.f32 %v780_v15, %v773_v7  ;;  %v782_v19 = vadd.f32 %v780_v15, %v774_v8  ;;  %v783_v20 = vadd.f32 %v780_v15, %v775_v9  ;;  %v784_v21 = vadd.f32 %v780_v15, %v776_v12  ;;  %v844_v7 = vld [vmem:[#allocation7 + $0x78] sm:$0xff]  ;;  %v1049_v9 = vld [vmem:[#allocation7 + $0x100] sm:$0xff]  ;;  %v1050_v12 = vld [vmem:[#allocation7 + $0x108] sm:$0xff] }
 0x325   :  { %v2432_v8 = vpack.c.bf16 %v844_v7, %v843_v6  ;;  %v2436_v14 = vpack.c.bf16 %v1050_v12, %v1049_v9  ;;  %v1051_v15 = vld [vmem:[#allocation7 + $0x110] sm:$0xff] }
 0x326   :  { %v785_v25 = vmax.f32 %v781_v18, 0.0  ;;  %v2982_v28 = vmax.f32 %v782_v19, 0.0  ;;  %v2984_v41 = vmax.f32 %v783_v20, 0.0  ;;  %v2986_v38 = vmax.f32 %v784_v21, 0.0  ;;  %v1053_v19 = vld [vmem:[#allocation7 + $0x120] sm:$0xff]  ;;  %v1054_v20 = vld [vmem:[#allocation7 + $0x128] sm:$0xff] }
 0x327   :  { %v2440_v18 = vpack.c.bf16 %v1052_v17, %v1051_v15  ;;  %v2444_v22 = vpack.c.bf16 %v1054_v20, %v1053_v19 }
 0x328   :  { %v816_v29 = vrot.slane %v785_v25, 7  ;;  %2087 = vmatprep.mubr.f32.mxu0 %v785_v25  ;;  %v1034_v32 = vrot.slane %v785_v25, 1  ;;  %v818_v33 = vrot.slane %v2982_v28, 7  ;;  %v1035_v35 = vrot.slane %v2982_v28, 1  ;;  %v1056_v25 = vld [vmem:[#allocation7 + $0x138] sm:$0xff] }
 0x329   :  { %2088 = vmatmul.mubr.f32.vlgmr.msra.gmra.mrb[8].mxu0 %v2982_v28  ;;  %v821_v42 = vrot.slane %v2984_v41, 7  ;;  %v1039_v43 = vrot.slane %v2984_v41, 1  ;;  %v823_v44 = vrot.slane %v2986_v38, 7  ;;  %v1040_v47 = vrot.slane %v2986_v38, 1 }
 0x32a   :  { %2407 = vmatpush3.bf16.msra.mxu0 %v2404_v61  ;;  %2090 = vmatprep.mubr.f32.mxu0 %v2984_v41  ;;  %v819_v48 = vsel %vm116_vm2, %v816_v29, %v818_v33  ;;  %v1036_v49 = vsel %vm332_vm3, %v1034_v32, %v1035_v35  ;;  %v817_v55 = vsel %vm116_vm2, %v2989_v45, %v816_v29  ;;  %v840_v61 = vld [vmem:[#allocation7 + $0x58] sm:$0xff]  ;;  %v1058_v29 = vld [vmem:[#allocation7 + $0x148] sm:$0xff]  ;;  %v1059_v33 = vld [vmem:[#allocation7 + $0x150] sm:$0xff] }
 0x32b   :  { %2409 = vmatprep.subr.bf16.mxu0 %v2408_v46  ;;  %v824_v51 = vsel %vm116_vm2, %v821_v42, %v823_v44  ;;  %v3007_v52 = vsel %vm332_vm3, %v1039_v43, %v1040_v47  ;;  %v2424_v62 = vpack.c.bf16 %v840_v61, %v839_v60  ;;  %v822_v21 = vsel %vm116_vm2, %v2989_v45, %v821_v42  ;;  %v1062_v42 = vld [vmem:[#allocation7 + $0x168] sm:$0xff]  ;;  %v1063_v44 = vld [vmem:[#allocation7 + $0x170] sm:$0xff] }
 0x32c   :  { %v2448_v41 = vpack.c.bf16 %v1056_v25, %v1055_v24  ;;  %v2456_v45 = vpack.c.bf16 %v1060_v36, %v1059_v33  ;;  %v2460_v43 = vpack.c.bf16 %v1062_v42, %v1061_v39  ;;  %v1492_v39 = vld [vmem:[%s3139_s3 + $0x18] sm:$0xff]  ;;  %v1497_v42 = vld [vmem:[%s3144_s8] sm:$0x1] }
 0x32d   :  { %2091 = vmatmul.mubr.f32.gmra.mrb[10].mxu0 %v2986_v38 }
 0x32e   :  { %2411 = vmatpush3.bf16.msra.mxu0 %v2408_v46  ;;  %2125 = vmatprep.mubr.f32.mxu0 %v817_v55  ;;  %v1057_v46 = vld [vmem:[#allocation7 + $0x140] sm:$0xff]  ;;  %v1042_v55 = vrot.slane %v808_v53, 1 }
 0x32f   :  { %2413 = vmatprep.subr.bf16.mxu0 %v2412_v50  ;;  %v2452_v32 = vpack.c.bf16 %v1058_v29, %v1057_v46  ;;  %v1489_v46 = vld [vmem:[%s3139_s3] sm:$0xff]  ;;  %v1490_v29 = vld [vmem:[%s3139_s3 + $0x8] sm:$0xff] }
 0x330   :  { %v2516_v36 = vpack.c.bf16 %v1490_v29, %v1489_v46 }
 0x332   :  { %2415 = vmatpush3.bf16.msra.mxu0 %v2412_v50  ;;  %v804_v50 = vld [vmem:[#allocation3 + $0x18] sm:$0x1] }
 0x333   :  { %2417 = vmatprep.subr.bf16.mxu0 %v2416_v56 }
 0x336   :  { %2419 = vmatpush3.bf16.msra.mxu0 %v2416_v56  ;;  %v1043_v56 = vsel %vm332_vm3, %v1040_v47, %v1042_v55 }
 0x337   :  { %2421 = vmatprep.subr.bf16.mxu0 %v2420_v59 }
 0x33a   :  { %2423 = vmatpush3.bf16.msra.mxu0 %v2420_v59 }
 0x33b   :  { %2425 = vmatprep.subr.bf16.mxu0 %v2424_v62 }
 0x33e   :  { %2427 = vmatpush3.bf16.msra.mxu0 %v2424_v62 }
 0x33f   :  { %2429 = vmatprep.subr.bf16.mxu0 %v2428_v5 }
 0x342   :  { %2431 = vmatpush3.bf16.msra.mxu0 %v2428_v5 }
 0x343   :  { %2433 = vmatprep.subr.bf16.mxu0 %v2432_v8 }
 0x346   :  { %2435 = vmatpush3.bf16.msra.mxu0 %v2432_v8 }
 0x347   :  { %2437 = vmatprep.subr.bf16.mxu0 %v2436_v14 }
 0x349   :  { %2126 = vmatmul.mubr.f32.vlgmr.msra.gmra.mrb[8].mxu0 %v819_v48  ;;  %v1064_v48 = vld [vmem:[#allocation7 + $0x178] sm:$0xff] }
 0x34a   :  { %2128 = vmatprep.mubr.f32.mxu0 %v822_v21  ;;  %2439 = vmatpush3.bf16.msra.mxu0 %v2436_v14 }
 0x34b   :  { %2441 = vmatprep.subr.bf16.mxu0 %v2440_v18 }
 0x34d   :  { %2129 = vmatmul.mubr.f32.gmra.mrb[10].mxu0 %v824_v51  ;;  %v1037_v51 = vrot.slane %v804_v50, 1 }
 0x34e   :  { %2443 = vmatpush3.bf16.msra.mxu0 %v2440_v18  ;;  %2163 = vmatprep.mubr.f32.mxu0 %v1036_v49  ;;  %v2464_v49 = vpack.c.bf16 %v1064_v48, %v1063_v44  ;;  %v1493_v44 = vld [vmem:[%s3139_s3 + $0x20] sm:$0xff]  ;;  %v1494_v48 = vld [vmem:[%s3139_s3 + $0x28] sm:$0xff] }
 0x34f   :  { %2445 = vmatprep.subr.bf16.mxu0 %v2444_v22  ;;  %v1038_v54 = vsel %vm332_vm3, %v1035_v35, %v1037_v51 }
 0x352   :  { %2447 = vmatpush3.bf16.msra.mxu0 %v2444_v22  ;;  %v1154_v22 = vld [vmem:[%s3142_s6] sm:$0x1] }
 0x353   :  { %2449 = vmatprep.subr.bf16.mxu0 %v2448_v41 }
 0x356   :  { %2451 = vmatpush3.bf16.msra.mxu0 %v2448_v41  ;;  %v1155_v41 = vld [vmem:[%s3143_s7] sm:$0x1] }
 0x357   :  { %2453 = vmatprep.subr.bf16.mxu0 %v2452_v32 }
 0x35a   :  { %2455 = vmatpush3.bf16.msra.mxu0 %v2452_v32 }
 0x35b   :  { %2457 = vmatprep.subr.bf16.mxu0 %v2456_v45 }
 0x35e   :  { %2459 = vmatpush3.bf16.msra.mxu0 %v2456_v45  ;;  %v1491_v45 = vld [vmem:[%s3139_s3 + $0x10] sm:$0xff] }
 0x35f   :  { %2461 = vmatprep.subr.bf16.mxu0 %v2460_v43 }
 0x362   :  { %2463 = vmatpush3.bf16.msra.mxu0 %v2460_v43  ;;  %v2520_v43 = vpack.c.bf16 %v1492_v39, %v1491_v45 }
 0x363   :  { %2465 = vmatprep.subr.bf16.mxu0 %v2464_v49 }
 0x366   :  { %2467 = vmatpush3.bf16.msra.mxu0 %v2464_v49  ;;  %v1496_v49 = vld [vmem:[%s3139_s3 + $0x38] sm:$0xff] }
 0x369   :  { %2164 = vmatmul.mubr.f32.vlgmr.msra.gmra.mrb[8].mxu0 %v1038_v54 }
 0x36a   :  { %2166 = vmatprep.mubr.f32.mxu0 %v3007_v52 }
 0x36d   :  { %2167 = vmatmul.mubr.f32.gmra.mrb[10].mxu0 %v1043_v56 }
 0x43c   :  { %v3021_v57 = vpop.f32.mrb[8].mxu0 }
 0x43d   :  { %v1166_v58 = vmul.f32 %v3021_v57, %v3021_v57  ;;  %v3025_v59 = vpop.f32.mrb[9].mxu0 }
 0x43e   :  { %v1156_v28 = vadd.f32 %v3021_v57, %v3025_v59  ;;  %v1165_v35 = vmul.f32 %v3025_v59, %v3025_v59 }
 0x440   :  { %v1169_v60 = vadd.f32 %v1166_v58, %v1165_v35  ;;  %v3031_v52 = vpop.f32.mrb[10].mxu0 }
 0x441   :  { %v3033_v38 = vpop.f32.mrb[11].mxu0  ;;  %v1168_v62 = vmul.f32 %v3031_v52, %v3031_v52 }
 0x442   :  { %v1157_v47 = vadd.f32 %v1156_v28, %v3033_v38  ;;  %v1167_v61 = vmul.f32 %v3033_v38, %v3033_v38 }
 0x444   :  { %v1158_v63 = vadd.f32 %v3031_v52, %v1157_v47  ;;  %v1170_v4 = vadd.f32 %v1169_v60, %v1167_v61 }
 0x446   :  { %v1159_v5 = vrot.slane %v1158_v63, 4  ;;  %v1171_v6 = vadd.f32 %v1170_v4, %v1168_v62 }
 0x448   :  { %v1160_v7 = vadd.f32 %v1159_v5, %v1158_v63  ;;  %v1172_v15 = vrot.slane %v1171_v6, 4 }
 0x44a   :  { %v1161_v8 = vrot.slane %v1160_v7, 2  ;;  %v1173_v17 = vadd.f32 %v1172_v15, %v1171_v6 }
 0x44c   :  { %v1162_v9 = vadd.f32 %v1161_v8, %v1160_v7 }
 0x44e   :  { %v1163_v12 = vrot.slane %v1162_v9, 1 }
 0x450   :  { %v1164_v14 = vadd.f32 %v1163_v12, %v1162_v9 }
 0x452   :  { %2202 = vmatmul.mubr.f32.vlgmr.msra.gmra.mrb[4].mxu1 %v1164_v14 }
 0x453   :  { %2494 = vmatpush3.bf16.msra.mxu1 %v2791_v26  ;;  %2236 = vmatprep.mubr.msk.f32.mxu1 %vm2638_vm4, %v2636_v0  ;;  %v1174_v26 = vrot.slane %v1173_v17, 2 }
 0x454   :  { %2495 = vmatprep.subr.bf16.mxu1 %v2637_v1 }
 0x457   :  { %2497 = vmatpush3.bf16.msra.mxu1 %v2794_v30  ;;  %v1175_v30 = vadd.f32 %v1174_v26, %v1173_v17 }
 0x458   :  { %2498 = vmatprep.subr.bf16.mxu1 %v2637_v1 }
 0x45b   :  { %2500 = vmatpush3.bf16.msra.mxu1 %v2811_v40  ;;  %v1176_v40 = vrot.slane %v1175_v30, 1 }
 0x45c   :  { %2501 = vmatprep.subr.bf16.mxu1 %v2637_v1 }
 0x45f   :  { %2503 = vmatpush3.bf16.msra.mxu1 %v2852_v23  ;;  %v1177_v23 = vadd.f32 %v1176_v40, %v1175_v30 }
 0x460   :  { %2504 = vmatprep.subr.bf16.mxu1 %v2637_v1 }
 0x463   :  { %2506 = vmatpush3.bf16.msra.mxu1 %v2862_v27 }
 0x464   :  { %2507 = vmatprep.subr.bf16.mxu1 %v2637_v1 }
 0x467   :  { %2509 = vmatpush3.bf16.msra.mxu1 %v2872_v31 }
 0x468   :  { %2510 = vmatprep.subr.bf16.mxu1 %v2637_v1 }
 0x46b   :  { %2512 = vmatpush3.bf16.msra.mxu1 %v2882_v34 }
 0x46c   :  { %2513 = vmatprep.subr.bf16.mxu1 %v2637_v1 }
 0x46f   :  { %2515 = vmatpush3.bf16.msra.mxu1 %v2892_v37 }
 0x470   :  { %2239 = vmatprep.subr.mxu1 %v2636_v0 }
 0x472   :  { %2237 = vmatmul.mubr.f32.vlgmr.msra.gmra.mrb[6].mxu1 %v1177_v23 }
 0x473   :  { %2240 = vmatpush3.msra.mxu1 %v2959_v3  ;;  %2241 = vmatprep.mubr.msk.f32.mxu1 %vm2638_vm4, %v2636_v0 }
 0x474   :  { %2244 = vmatprep.subr.mxu1 %v2636_v0 }
 0x525   :  { %v1244_v27 = vpop.f32.mrb[4].mxu1 }
 0x526   :  { %v2203_v31 = vpop.f32.mrb[5].mxu1  ;;  %v1248_v18 = vmul.f32 0.001953125, %v1244_v27 }
 0x528   :  { %v1320_v19 = vmul.f32 %v1248_v18, %v1248_v18 }
 0x545   :  { %v1315_v34 = vpop.f32.mrb[6].mxu1 }
 0x546   :  { %v1319_v1 = vmul.f32 0.001953125, %v1315_v34  ;;  %v2238_v20 = vpop.f32.mrb[7].mxu1 }
 0x548   :  { %v1321_v21 = vsub.f32 %v1319_v1, %v1320_v19 }
 0x54a   :  { %v1322_v37 = vadd.f32 1e-05, %v1321_v21 }
 0x54c   :  { %2558 = vrsqrt.f32 %v1322_v37 }
 0x556   :  { %v2559_v24 = vpop.eup %2558 }
 0x557   :  { %v1324_v25 = vmul.f32 %v2559_v24, %v1154_v22 }
 0x559   :  { %2242 = vmatmul.mubr.msk.f32.vlgmr.msra.gmra.mrb[8].mxu1 %vm622_vm5, %v1324_v25  ;;  %v1325_v32 = vmul.f32 %v1324_v25, %v1248_v18 }
 0x55a   :  { %2245 = vmatpush3.msra.mxu1 %v2959_v3  ;;  %2246 = vmatprep.mubr.msk.f32.mxu1 %vm2638_vm4, %v2636_v0 }
 0x55b   :  { %2249 = vmatprep.subr.mxu1 %v2636_v0  ;;  %v1326_v33 = vsub.f32 %v1155_v41, %v1325_v32 }
 0x55d   :  { %2247 = vmatmul.mubr.msk.f32.vlgmr.msra.gmra.mrb[10].mxu1 %vm622_vm5, %v1326_v33 }
 0x55e   :  { %2250 = vmatpush3.msra.mxu1 %v2959_v3  ;;  %2251 = vmatprep.mubr.msk.f32.mxu1 %vm2638_vm4, %v2636_v0  ;;  %v2524_v0 = vpack.c.bf16 %v1494_v48, %v1493_v44  ;;  %v1495_v3 = vld [vmem:[%s3139_s3 + $0x30] sm:$0xff]  ;;  %s2639_s3 = smov [#allocation9]  }
 0x55f   :  { %2517 = vmatprep.subr.bf16.mxu1 %v2516_v36  ;;  %v2528_v50 = vpack.c.bf16 %v1496_v49, %v1495_v3  ;;  %s1689_s2 = sshll.u32 %s2639_s3, 4  ;;  %s1690_s2 = int_to_ptr.vmem [resolvable:$true] %s1689_s2 }
 0x560   :  { %s2604_s23 = scalar_lea.vmem %s1690_s2, 512  ;;  %p2609_p3 = scmp.lt.s32.totalorder %s1690_s2, %s1690_s2 }
 0x561   :  { %2252 = vmatmul.mubr.msk.f32.vlgmr.msra.gmra.mrb[12].mxu1 %vm622_vm5, %v1497_v42  ;;  %p2605_p2 = scmp.ne.s32.totalorder %s1690_s2, %s2604_s23  ;;  %p2610_p4 = scmp.lt.s32.totalorder %s2604_s23, %s2604_s23 }
 0x562   :  { %2519 = vmatpush3.bf16.msra.mxu1 %v2516_v36  ;;  %2270 = vmatprep.mubr.msk.f32.mxu1 %vm88_vm0, %v2750_v10 }
 0x563   :  { %2521 = vmatprep.subr.bf16.mxu1 %v2520_v43  ;;  %p2611_p5 = por %p2610_p4, %p2609_p3 }
 0x565   :  { %p2612_p6 = pnand %p2611_p5, %p2605_p2 }
 0x566   :  { %2523 = vmatpush3.bf16.msra.mxu1 %v2520_v43 }
 0x567   :  { %2525 = vmatprep.subr.bf16.mxu1 %v2524_v0 }
 0x56a   :  { %2527 = vmatpush3.bf16.msra.mxu1 %v2524_v0 }
 0x56b   :  { %2529 = vmatprep.subr.bf16.mxu1 %v2528_v50 }
 0x56e   :  { %2531 = vmatpush3.bf16.msra.mxu1 %v2528_v50 }
 0x571   :  { %2271 = vmatmul.mubr.msk.f32.vlgmr.msra.gmra.mrb[14].mxu1 %vm88_vm0, %v2757_v11 }
 0x572   :  { %2273 = vmatprep.mubr.msk.f32.mxu1 %vm88_vm0, %v2764_v13 }
 0x575   :  { %2274 = vmatmul.mubr.msk.f32.gmra.mrb[16].mxu1 %vm88_vm0, %v2771_v16 }
 0x62c   :  { %v1396_v10 = vpop.f32.mrb[8].mxu1 }
 0x62d   :  { %v1476_v51 = vrot.slane %v1396_v10, %v2974_v2  ;;  %v2243_v53 = vpop.f32.mrb[9].mxu1 }
 0x62f   :  { %v1478_v54 = vmul.f32 %v3021_v57, %v1476_v51  ;;  %v1477_v55 = vmul.f32 %v1476_v51, %v3025_v59  ;;  %v1480_v56 = vmul.f32 %v3031_v52, %v1476_v51  ;;  %v1479_v58 = vmul.f32 %v1476_v51, %v3033_v38 }
 0x630   :  { %v1469_v28 = vpop.f32.mrb[10].mxu1 }
 0x631   :  { %v1484_v11 = vrot.slane %v1469_v28, %v2974_v2  ;;  %v2248_v35 = vpop.f32.mrb[11].mxu1 }
 0x633   :  { %v1486_v13 = vadd.f32 %v1484_v11, %v1478_v54  ;;  %v1485_v60 = vadd.f32 %v1484_v11, %v1477_v55  ;;  %v1488_v47 = vadd.f32 %v1484_v11, %v1480_v56  ;;  %v1487_v16 = vadd.f32 %v1484_v11, %v1479_v58 }
 0x634   :  { %v1567_v61 = vpop.f32.mrb[12].mxu1 }
 0x635   :  { %v2253_v62 = vpop.f32.mrb[13].mxu1  ;;  %v1574_v63 = vrot.slane %v1567_v61, %v2974_v2 }
 0x644   :  { %v2272_v4 = vpop.f32.mrb[14].mxu1 }
 0x645   :  { %v1659_v57 = vadd.f32 %v2272_v4, %v1574_v63  ;;  %v1653_v5 = vpop.f32.mrb[15].mxu1 }
 0x646   :  { %v1654_v59 = vadd.f32 %v1653_v5, %v1574_v63 }
 0x647   :  { %v1673_v6 = vadd.f32 %v1659_v57, %v1486_v13 }
 0x648   :  { %v1672_v52 = vadd.f32 %v1654_v59, %v1485_v60  ;;  %v2275_v7 = vpop.f32.mrb[16].mxu1 }
 0x649   :  { %v1677_v38 = vmax.f32 %v1673_v6, 0.0  ;;  %v1669_v8 = vadd.f32 %v2275_v7, %v1574_v63  ;;  %v1663_v9 = vpop.f32.mrb[17].mxu1 }
 0x64a   :  { %v1676_v12 = vmax.f32 %v1672_v52, 0.0  ;;  %v1664_v14 = vadd.f32 %v1663_v9, %v1574_v63 }
 0x64b   :  { %1681 = vst [vmem:[#allocation9 + $0x8] sm:$0xff] %v1677_v38  ;;  %v1675_v15 = vadd.f32 %v1669_v8, %v1488_v47 }
 0x64c   :  { %1680 = vst [vmem:[#allocation9] sm:$0xff] %v1676_v12  ;;  %v1674_v17 = vadd.f32 %v1664_v14, %v1487_v16 }
 0x64d   :  { %v1679_v26 = vmax.f32 %v1675_v15, 0.0 }
 0x64e   :  { %v1678_v2 = vmax.f32 %v1674_v17, 0.0 }
 0x64f   :  { %1683 = vst [vmem:[#allocation9 + $0x18] sm:$0xff] %v1679_v26 }
 0x650   :  { %1682 = vst [vmem:[#allocation9 + $0x10] sm:$0xff] %v1678_v2 }
 0x651   :  { %2615 = shalt.err (!%p2612_p6)
}
 0x652   :  { %s2616_s25 = scalar_lea.hbm %s3147_s11, 512 }
 0x653   :  { %p2617_p7 = scmp.ne.s32.totalorder %s3147_s11, %s2616_s25  ;;  %p2620_p8 = scmp.lt.u32.totalorder %s2616_s25, %s3147_s11 }
 0x655   :  { %p2622_p9 = pnand %p2620_p8, %p2617_p7 }
 0x657   :  { %2625 = shalt.err (!%p2622_p9)
}
 0x658   :  { %1695 = dma.vmem_to_hbm [thread:$0]  %s1690_s2, 512, %s3147_s11, [#allocation6], %s2633_s27, %s2633_s27, %s2634_s28  }
 0x659   :  { %2630 = dma.done.wait [#allocation6], 512  }
 0x65a   :  { %2631 = vsyncadd [#allocation6], 4294966784 }
 0x65b   :  { %1699 = vsyncpa [#allocation5], 1 }
 0x65c   :  { %1700 = vsyncpa [#allocation8], 1 }
 0x65d   :  { %1701 = vsyncpa [#allocation6], 1 }

</bundles_post_ra>
